<compile_context>
chip_gen: v7x
topology: tpu7x:2x2x1
jax: 0.10.0
libtpu: 0.0.40
codegen_flags: <defaults>
</compile_context>

<pallas_src>
import jax
import jax.numpy as jnp
import numpy as np
from jax.experimental import pallas as pl
from jax.experimental.pallas import tpu as pltpu


def _erf_approx(x):
    # Abramowitz & Stegun 7.1.26 rational approximation of erf (max abs err
    # ~1.5e-7), built from exp / mul / where only (exp goes to the EUP).
    p = 0.3275911
    a1, a2, a3, a4, a5 = (0.254829592, -0.284496736, 1.421413741,
                          -1.453152027, 1.061405429)
    ax = jnp.abs(x)
    t = pl.reciprocal(1.0 + p * ax, approx=False)
    poly = ((((a5 * t + a4) * t + a3) * t + a2) * t + a1) * t
    y = 1.0 - poly * jnp.exp(-ax * ax)
    return jnp.where(x < 0.0, -y, y)


def _gelu_exact(x):
    # torch.nn.GELU() default = exact erf-based GELU.
    return 0.5 * x * (1.0 + _erf_approx(x * 0.7071067811865476))


def _cross_modal_match_kernel(left_ref, lmask_ref, right_ref, rmask_ref,
                              w1l_ref, b1l_ref, w2l_ref, b2l_ref,
                              w1r_ref, b1r_ref, w2r_ref, b2r_ref,
                              out_ref):
    TB, L, Dl = left_ref.shape
    _, R, Dr = right_ref.shape
    H = w2l_ref.shape[1]
    cd = w1l_ref.dtype            # MXU-operand dtype (f32, or bf16 under the flag)

    # Fold the batch tile into the matmul row dim for the two FC MLPs
    # (L and R are padded to multiples of 8, so these reshapes are layout-preserving).
    left2 = left_ref[...].reshape(TB * L, Dl)     # (TB*L, Dl)
    right2 = right_ref[...].reshape(TB * R, Dr)   # (TB*R, Dr)

    # left_fc / right_fc: Linear -> GELU -> Linear (MXU matmuls, f32 accumulation).
    hl = jnp.dot(left2, w1l_ref[...], preferred_element_type=jnp.float32) + b1l_ref[...]
    hl = _gelu_exact(hl).astype(cd)
    hl = jnp.dot(hl, w2l_ref[...], preferred_element_type=jnp.float32) + b2l_ref[...]

    hr = jnp.dot(right2, w1r_ref[...], preferred_element_type=jnp.float32) + b1r_ref[...]
    hr = _gelu_exact(hr).astype(cd)
    hr = jnp.dot(hr, w2r_ref[...], preferred_element_type=jnp.float32) + b2r_ref[...]

    hl3 = hl.reshape(TB, L, H)    # f32
    hr3 = hr.reshape(TB, R, H)    # f32

    # Left-attends-over-right attention logits (SCAN style).
    # TODO(synk): BidirectionalAttention source was not provided with the module;
    # we assume unpadding masks (1 = valid) and a masked softmax over the right axis.
    # TODO(synk): if the bundle dump shows a vxpose of hr3 for this NT contraction,
    # transpose the (much smaller) hl3 operand instead.
    sim = jnp.einsum("bld,brd->blr", hl3.astype(cd), hr3.astype(cd),
                     preferred_element_type=jnp.float32)            # (TB, L, R)
    sim = jnp.where(rmask_ref[...] > 0.0, sim, -1e9)
    sim = sim - jnp.max(sim, axis=-1, keepdims=True)
    e = jnp.exp(sim)
    # Softmax denominator intentionally dropped: the per-row 1/Z scale is removed
    # exactly by the L2 normalization of left_attn below.
    left_attn = jnp.einsum("blr,brd->bld", e.astype(cd), hr3.astype(cd),
                           preferred_element_type=jnp.float32)       # (TB, L, H)

    # F.normalize(p=2, dim=-1), eps = 1e-12  (rsqrt form -> EUP)
    ln = hl3 * jax.lax.rsqrt(
        jnp.maximum(jnp.sum(hl3 * hl3, axis=-1, keepdims=True), 1e-24))
    an = left_attn * jax.lax.rsqrt(
        jnp.maximum(jnp.sum(left_attn * left_attn, axis=-1, keepdims=True), 1e-24))

    # left_match = sum(ln * an, dim=-1) * left_mask  -> lane-dense (TB, L)
    out_ref[...] = jnp.sum(ln * an, axis=-1) * lmask_ref[...]


def _round_up(x, m):
    return ((x + m - 1) // m) * m


def _pad_to(x, shape):
    pads = [(0, s - d) for d, s in zip(x.shape, shape)]
    if all(p == (0, 0) for p in pads):
        return x
    return jnp.pad(x, pads)


def _vmem_phys_bytes():
    try:
        return int(pltpu.get_tpu_info().vmem_capacity_bytes)
    except Exception:
        return 64 << 20   # conservative fallback (v7x per-TC VMEM)


def _tensorcores_per_chip():
    try:
        kind = (getattr(jax.devices()[0], "device_kind", "") or "").lower()
        if "v7" in kind:
            return 2
    except Exception:
        pass
    return 1


def _step_vmem_bytes(tb, Lp, Rp, Dl, Dr, H, in_itemsize):
    """Rough per-step VMEM footprint: double-buffered I/O + weights + f32 temps."""
    streamed = (2 * (tb * Lp * Dl + tb * Rp * Dr) * in_itemsize
                + 2 * (tb * Lp + tb * Rp) * 4 + 2 * tb * Lp * 4)
    weights = 2 * ((Dl + Dr) * H + 2 * H * H + 4 * H) * in_itemsize
    inter = (3 * tb * Lp * H + tb * Rp * H + 2 * tb * Lp * Rp) * 4
    return streamed + weights + 2 * inter   # 2x slack on intermediates / temps


def _choose_batch_tile(B, Lp, Rp, Dl, Dr, H, in_itemsize):
    """TB targets MXU row fill (TB*Lp >= ~256 folded rows) under a VMEM budget.

    Legality of the 2-D (TB, Lp) mask/output blocks requires TB % 8 == 0 or
    TB == Bp, so we return either TB == B (single grid step) or a multiple of 8.
    """
    budget = max(16 << 20, _vmem_phys_bytes() // 2)

    def fits(tb):
        return _step_vmem_bytes(tb, Lp, Rp, Dl, Dr, H, in_itemsize) <= budget

    tb = max(1, -(-256 // Lp))            # ceil(256 / Lp)
    if tb >= B:
        tb = B
        if fits(tb):
            return tb                     # single grid step; TB == Bp
        while tb > 1 and not fits(tb):
            tb //= 2
    # Multi-step grid: keep TB a multiple of 8.
    tb = max(8, (tb // 8) * 8)
    while tb > 8 and not fits(tb):
        tb -= 8
    return tb


def cross_modal_match(params, left, left_mask, right, right_mask,
                      batch_tile=None, use_bf16_matmul=False):
    """JAX wrapper around the Pallas kernel.

    left: (B, L, left_dim), right: (B, R, right_dim),
    left_mask: (B, L), right_mask: (B, R)  -- 1.0 for valid tokens.
    Returns (B, 1, L), matching CrossModalMatchLayer.forward.
    """
    B, L, Dl = left.shape
    _, R, Dr = right.shape
    H = params["w2l"].shape[1]

    f32 = jnp.float32
    in_dtype = jnp.bfloat16 if use_bf16_matmul else f32
    in_itemsize = jnp.dtype(in_dtype).itemsize

    Lp = _round_up(L, 8)        # sublane alignment of the folded left rows
    Rp = _round_up(R, 8)        # sublane alignment only (no 128-padding of R)

    TB = (_choose_batch_tile(B, Lp, Rp, Dl, Dr, H, in_itemsize)
          if batch_tile is None else batch_tile)
    Bp = _round_up(B, TB)
    # v7x: keep the 'parallel' grid length even so both TensorCores stay busy.
    if _tensorcores_per_chip() >= 2 and (Bp // TB) > 1 and (Bp // TB) % 2 == 1:
        Bp += TB

    left_p = _pad_to(left.astype(in_dtype), (Bp, Lp, Dl))
    right_p = _pad_to(right.astype(in_dtype), (Bp, Rp, Dr))
    lmask_p = _pad_to(left_mask.astype(f32), (Bp, Lp))                   # (Bp, Lp)
    rmask_p = _pad_to(right_mask.astype(f32)[:, None, :], (Bp, 1, Rp))   # (Bp, 1, Rp)

    w1l = params["w1l"].astype(in_dtype); b1l = params["b1l"].astype(f32)
    w2l = params["w2l"].astype(in_dtype); b2l = params["b2l"].astype(f32)
    w1r = params["w1r"].astype(in_dtype); b1r = params["b1r"].astype(f32)
    w2r = params["w2r"].astype(in_dtype); b2r = params["b2r"].astype(f32)

    flops = 2 * Bp * (Lp * Dl * H + Lp * H * H + Rp * Dr * H + Rp * H * H
                      + 2 * Lp * Rp * H)
    transcendentals = Bp * (H * (Lp + Rp) + Lp * Rp + 2 * Lp)
    bytes_accessed = (in_itemsize * (Bp * Lp * Dl + Bp * Rp * Dr
                                     + (Dl + Dr) * H + 2 * H * H)
                      + 4 * (2 * Bp * Lp + Bp * Rp + 4 * H))

    est = _step_vmem_bytes(TB, Lp, Rp, Dl, Dr, H, in_itemsize)
    vmem_limit = int(min(max(32 << 20, 2 * est), _vmem_phys_bytes() * 3 // 4))

    out2d = pl.pallas_call(
        _cross_modal_match_kernel,
        out_shape=jax.ShapeDtypeStruct((Bp, Lp), jnp.float32),
        grid_spec=pltpu.PrefetchScalarGridSpec(
            num_scalar_prefetch=0,
            grid=(Bp // TB,),
            in_specs=[
                pl.BlockSpec((TB, Lp, Dl), lambda b: (b, 0, 0)),   # left
                pl.BlockSpec((TB, Lp), lambda b: (b, 0)),          # left mask
                # NOTE: if the right-block DMA becomes exposed at large shapes,
                # bump only this spec to pipeline_mode=pl.Buffered(3).
                pl.BlockSpec((TB, Rp, Dr), lambda b: (b, 0, 0)),   # right
                pl.BlockSpec((TB, 1, Rp), lambda b: (b, 0, 0)),    # right mask
                pl.BlockSpec((Dl, H), lambda b: (0, 0)),           # left_fc.0 weight
                pl.BlockSpec((1, H), lambda b: (0, 0)),            # left_fc.0 bias
                pl.BlockSpec((H, H), lambda b: (0, 0)),            # left_fc.2 weight
                pl.BlockSpec((1, H), lambda b: (0, 0)),            # left_fc.2 bias
                pl.BlockSpec((Dr, H), lambda b: (0, 0)),           # right_fc.0 weight
                pl.BlockSpec((1, H), lambda b: (0, 0)),            # right_fc.0 bias
                pl.BlockSpec((H, H), lambda b: (0, 0)),            # right_fc.2 weight
                pl.BlockSpec((1, H), lambda b: (0, 0)),            # right_fc.2 bias
            ],
            out_specs=pl.BlockSpec((TB, Lp), lambda b: (b, 0)),
        ),
        compiler_params=pltpu.CompilerParams(
            dimension_semantics=("parallel",),
            vmem_limit_bytes=vmem_limit),
        cost_estimate=pl.CostEstimate(flops=flops,
                                      transcendentals=transcendentals,
                                      bytes_accessed=bytes_accessed),
    )(left_p, lmask_p, right_p, rmask_p,
      w1l, b1l, w2l, b2l, w1r, b1r, w2r, b2r)

    # unsqueeze(1) in the wrapper; trim batch / length padding.
    return out2d[:B, None, :L]


def init_params(key, left_dim, right_dim, hidden_dim):
    """Deterministic PyTorch-style (Kaiming-uniform-ish) init. Weights stored (in, out)."""
    def linear(k, din, dout):
        kw, kb = jax.random.split(k)
        bound = 1.0 / (din ** 0.5)
        w = jax.random.uniform(kw, (din, dout), jnp.float32, -bound, bound)
        b = jax.random.uniform(kb, (1, dout), jnp.float32, -bound, bound)
        return w, b
    k1, k2, k3, k4 = jax.random.split(key, 4)
    w1l, b1l = linear(k1, left_dim, hidden_dim)
    w2l, b2l = linear(k2, hidden_dim, hidden_dim)
    w1r, b1r = linear(k3, right_dim, hidden_dim)
    w2r, b2r = linear(k4, hidden_dim, hidden_dim)
    return dict(w1l=w1l, b1l=b1l, w2l=w2l, b2l=b2l,
                w1r=w1r, b1r=b1r, w2r=w2r, b2r=b2r)


def reference(params, left, left_mask, right, right_mask):
    """Pure-JAX reference of the same forward pass (exact erf GELU, full softmax)."""
    def fc(x, w1, b1, w2, b2):
        h = jax.nn.gelu(x @ w1 + b1[0], approximate=False)
        return h @ w2 + b2[0]
    hl = fc(left, params["w1l"], params["b1l"], params["w2l"], params["b2l"])
    hr = fc(right, params["w1r"], params["b1r"], params["w2r"], params["b2r"])
    sim = jnp.einsum("bld,brd->blr", hl, hr)
    sim = jnp.where(right_mask[:, None, :] > 0, sim, -1e9)
    attn = jax.nn.softmax(sim, axis=-1)
    la = jnp.einsum("blr,brd->bld", attn, hr) * left_mask[:, :, None]
    def l2n(x):
        return x / jnp.maximum(jnp.linalg.norm(x, axis=-1, keepdims=True), 1e-12)
    match = jnp.sum(l2n(hl) * l2n(la), axis=-1) * left_mask
    return match[:, None, :]


if __name__ == "__main__":
    key = jax.random.PRNGKey(0)
    B, L, R = 2, 8, 12
    LEFT_DIM, RIGHT_DIM, HIDDEN = 16, 24, 32

    k_param, k_left, k_right = jax.random.split(key, 3)
    params = init_params(k_param, LEFT_DIM, RIGHT_DIM, HIDDEN)
    input_left = jax.random.normal(k_left, (B, L, LEFT_DIM), jnp.float32)
    input_right = jax.random.normal(k_right, (B, R, RIGHT_DIM), jnp.float32)
    left_mask = (jnp.arange(L)[None, :] < jnp.array([6, 8])[:, None]).astype(jnp.float32)
    right_mask = (jnp.arange(R)[None, :] < jnp.array([12, 9])[:, None]).astype(jnp.float32)

    out = jax.block_until_ready(
        cross_modal_match(params, input_left, left_mask, input_right, right_mask))
    assert out.shape == (B, 1, L), out.shape

    ref = reference(params, input_left, left_mask, input_right, right_mask)
    np.testing.assert_allclose(np.asarray(out), np.asarray(ref), atol=1e-4, rtol=1e-4)

    print("KERNEL_OK")
</pallas_src>

<mosaic_0001>
module attributes {stable_mosaic.version = 11 : i64} {
  func.func @_cross_modal_match_kernel(%arg0: i32, %arg1: memref<2x8x16xf32, #tpu.memory_space<vmem>>, %arg2: memref<2x8xf32, #tpu.memory_space<vmem>>, %arg3: memref<2x16x24xf32, #tpu.memory_space<vmem>>, %arg4: memref<2x1x16xf32, #tpu.memory_space<vmem>>, %arg5: memref<16x32xf32, #tpu.memory_space<vmem>>, %arg6: memref<1x32xf32, #tpu.memory_space<vmem>>, %arg7: memref<32x32xf32, #tpu.memory_space<vmem>>, %arg8: memref<1x32xf32, #tpu.memory_space<vmem>>, %arg9: memref<24x32xf32, #tpu.memory_space<vmem>>, %arg10: memref<1x32xf32, #tpu.memory_space<vmem>>, %arg11: memref<32x32xf32, #tpu.memory_space<vmem>>, %arg12: memref<1x32xf32, #tpu.memory_space<vmem>>, %arg13: memref<2x8xf32, #tpu.memory_space<vmem>>) attributes {dimension_semantics = [#tpu.dimension_semantics<parallel>], iteration_bounds = array<i64: 1>, scalar_prefetch = 0 : i64, scratch_operands = 0 : i64, tpu.core_type = #tpu.core_type<tc>, window_params = [{transform_indices = @transform_0, window_bounds = array<i64: 2, 8, 16>}, {transform_indices = @transform_1, window_bounds = array<i64: 2, 8>}, {transform_indices = @transform_2, window_bounds = array<i64: 2, 16, 24>}, {transform_indices = @transform_3, window_bounds = array<i64: 2, 1, 16>}, {pipeline_mode = #tpu.pipeline_mode<synchronous>, transform_indices = @transform_4, window_bounds = array<i64: 16, 32>}, {pipeline_mode = #tpu.pipeline_mode<synchronous>, transform_indices = @transform_5, window_bounds = array<i64: 1, 32>}, {pipeline_mode = #tpu.pipeline_mode<synchronous>, transform_indices = @transform_6, window_bounds = array<i64: 32, 32>}, {pipeline_mode = #tpu.pipeline_mode<synchronous>, transform_indices = @transform_7, window_bounds = array<i64: 1, 32>}, {pipeline_mode = #tpu.pipeline_mode<synchronous>, transform_indices = @transform_8, window_bounds = array<i64: 24, 32>}, {pipeline_mode = #tpu.pipeline_mode<synchronous>, transform_indices = @transform_9, window_bounds = array<i64: 1, 32>}, {pipeline_mode = #tpu.pipeline_mode<synchronous>, transform_indices = @transform_10, window_bounds = array<i64: 32, 32>}, {pipeline_mode = #tpu.pipeline_mode<synchronous>, transform_indices = @transform_11, window_bounds = array<i64: 1, 32>}, {transform_indices = @transform_12, window_bounds = array<i64: 2, 8>}]} {
    %c0 = arith.constant 0 : index
    %c0_0 = arith.constant 0 : index
    %c0_1 = arith.constant 0 : index
    %0 = vector.load %arg1[%c0, %c0_0, %c0_1] : memref<2x8x16xf32, #tpu.memory_space<vmem>>, vector<2x8x16xf32>
    %1 = vector.shape_cast %0 : vector<2x8x16xf32> to vector<16x16xf32>
    %c0_2 = arith.constant 0 : index
    %c0_3 = arith.constant 0 : index
    %c0_4 = arith.constant 0 : index
    %2 = vector.load %arg3[%c0_2, %c0_3, %c0_4] : memref<2x16x24xf32, #tpu.memory_space<vmem>>, vector<2x16x24xf32>
    %3 = vector.shape_cast %2 : vector<2x16x24xf32> to vector<32x24xf32>
    %c0_5 = arith.constant 0 : index
    %c0_6 = arith.constant 0 : index
    %4 = vector.load %arg5[%c0_5, %c0_6] : memref<16x32xf32, #tpu.memory_space<vmem>>, vector<16x32xf32>
    %cst = arith.constant dense<0.000000e+00> : vector<16x32xf32>
    %5 = tpu.matmul %1, %4, %cst {dimension_numbers = #tpu.dot_dimension_numbers<[1], [0], [0], [1], [0, 0, 1, 1], [], []>} : vector<16x16xf32>, vector<16x32xf32>, vector<16x32xf32> -> vector<16x32xf32>
    %c0_7 = arith.constant 0 : index
    %c0_8 = arith.constant 0 : index
    %6 = vector.load %arg6[%c0_7, %c0_8] : memref<1x32xf32, #tpu.memory_space<vmem>>, vector<1x32xf32>
    %7 = vector.broadcast %6 : vector<1x32xf32> to vector<16x32xf32>
    %8 = arith.addf %5, %7 : vector<16x32xf32>
    %cst_9 = arith.constant 5.000000e-01 : f32
    %9 = vector.broadcast %cst_9 : f32 to vector<16x32xf32>
    %10 = arith.mulf %9, %8 : vector<16x32xf32>
    %cst_10 = arith.constant 0.707106769 : f32
    %11 = vector.broadcast %cst_10 : f32 to vector<16x32xf32>
    %12 = arith.mulf %8, %11 : vector<16x32xf32>
    %13 = math.absf %12 : vector<16x32xf32>
    %cst_11 = arith.constant 0.327591091 : f32
    %14 = vector.broadcast %cst_11 : f32 to vector<16x32xf32>
    %15 = arith.mulf %14, %13 : vector<16x32xf32>
    %cst_12 = arith.constant 1.000000e+00 : f32
    %16 = vector.broadcast %cst_12 : f32 to vector<16x32xf32>
    %17 = arith.addf %16, %15 : vector<16x32xf32>
    %18 = tpu.reciprocal %17 : vector<16x32xf32> -> vector<16x32xf32>
    %cst_13 = arith.constant 1.06140542 : f32
    %19 = vector.broadcast %cst_13 : f32 to vector<16x32xf32>
    %20 = arith.mulf %19, %18 : vector<16x32xf32>
    %cst_14 = arith.constant -1.45315206 : f32
    %21 = vector.broadcast %cst_14 : f32 to vector<16x32xf32>
    %22 = arith.addf %20, %21 : vector<16x32xf32>
    %23 = arith.mulf %22, %18 : vector<16x32xf32>
    %cst_15 = arith.constant 1.42141378 : f32
    %24 = vector.broadcast %cst_15 : f32 to vector<16x32xf32>
    %25 = arith.addf %23, %24 : vector<16x32xf32>
    %26 = arith.mulf %25, %18 : vector<16x32xf32>
    %cst_16 = arith.constant -0.284496725 : f32
    %27 = vector.broadcast %cst_16 : f32 to vector<16x32xf32>
    %28 = arith.addf %26, %27 : vector<16x32xf32>
    %29 = arith.mulf %28, %18 : vector<16x32xf32>
    %cst_17 = arith.constant 0.254829586 : f32
    %30 = vector.broadcast %cst_17 : f32 to vector<16x32xf32>
    %31 = arith.addf %29, %30 : vector<16x32xf32>
    %32 = arith.mulf %31, %18 : vector<16x32xf32>
    %cst_18 = arith.constant 0.000000e+00 : f32
    %33 = vector.broadcast %cst_18 : f32 to vector<16x32xf32>
    %34 = arith.subf %33, %13 : vector<16x32xf32>
    %35 = arith.mulf %34, %13 : vector<16x32xf32>
    %36 = math.exp %35 : vector<16x32xf32>
    %37 = arith.mulf %32, %36 : vector<16x32xf32>
    %cst_19 = arith.constant 1.000000e+00 : f32
    %38 = vector.broadcast %cst_19 : f32 to vector<16x32xf32>
    %39 = arith.subf %38, %37 : vector<16x32xf32>
    %cst_20 = arith.constant 0.000000e+00 : f32
    %40 = vector.broadcast %cst_20 : f32 to vector<16x32xf32>
    %41 = arith.cmpf olt, %12, %40 : vector<16x32xf32>
    %cst_21 = arith.constant 0.000000e+00 : f32
    %42 = vector.broadcast %cst_21 : f32 to vector<16x32xf32>
    %43 = arith.subf %42, %39 : vector<16x32xf32>
    %44 = arith.select %41, %43, %39 : vector<16x32xi1>, vector<16x32xf32>
    %cst_22 = arith.constant 1.000000e+00 : f32
    %45 = vector.broadcast %cst_22 : f32 to vector<16x32xf32>
    %46 = arith.addf %45, %44 : vector<16x32xf32>
    %47 = arith.mulf %10, %46 : vector<16x32xf32>
    %c0_23 = arith.constant 0 : index
    %c0_24 = arith.constant 0 : index
    %48 = vector.load %arg7[%c0_23, %c0_24] : memref<32x32xf32, #tpu.memory_space<vmem>>, vector<32x32xf32>
    %cst_25 = arith.constant dense<0.000000e+00> : vector<16x32xf32>
    %49 = tpu.matmul %47, %48, %cst_25 {dimension_numbers = #tpu.dot_dimension_numbers<[1], [0], [0], [1], [0, 0, 1, 1], [], []>} : vector<16x32xf32>, vector<32x32xf32>, vector<16x32xf32> -> vector<16x32xf32>
    %c0_26 = arith.constant 0 : index
    %c0_27 = arith.constant 0 : index
    %50 = vector.load %arg8[%c0_26, %c0_27] : memref<1x32xf32, #tpu.memory_space<vmem>>, vector<1x32xf32>
    %51 = vector.broadcast %50 : vector<1x32xf32> to vector<16x32xf32>
    %52 = arith.addf %49, %51 : vector<16x32xf32>
    %c0_28 = arith.constant 0 : index
    %c0_29 = arith.constant 0 : index
    %53 = vector.load %arg9[%c0_28, %c0_29] : memref<24x32xf32, #tpu.memory_space<vmem>>, vector<24x32xf32>
    %cst_30 = arith.constant dense<0.000000e+00> : vector<32x32xf32>
    %54 = tpu.matmul %3, %53, %cst_30 {dimension_numbers = #tpu.dot_dimension_numbers<[1], [0], [0], [1], [0, 0, 1, 1], [], []>} : vector<32x24xf32>, vector<24x32xf32>, vector<32x32xf32> -> vector<32x32xf32>
    %c0_31 = arith.constant 0 : index
    %c0_32 = arith.constant 0 : index
    %55 = vector.load %arg10[%c0_31, %c0_32] : memref<1x32xf32, #tpu.memory_space<vmem>>, vector<1x32xf32>
    %56 = vector.broadcast %55 : vector<1x32xf32> to vector<32x32xf32>
    %57 = arith.addf %54, %56 : vector<32x32xf32>
    %cst_33 = arith.constant 5.000000e-01 : f32
    %58 = vector.broadcast %cst_33 : f32 to vector<32x32xf32>
    %59 = arith.mulf %58, %57 : vector<32x32xf32>
    %cst_34 = arith.constant 0.707106769 : f32
    %60 = vector.broadcast %cst_34 : f32 to vector<32x32xf32>
    %61 = arith.mulf %57, %60 : vector<32x32xf32>
    %62 = math.absf %61 : vector<32x32xf32>
    %cst_35 = arith.constant 0.327591091 : f32
    %63 = vector.broadcast %cst_35 : f32 to vector<32x32xf32>
    %64 = arith.mulf %63, %62 : vector<32x32xf32>
    %cst_36 = arith.constant 1.000000e+00 : f32
    %65 = vector.broadcast %cst_36 : f32 to vector<32x32xf32>
    %66 = arith.addf %65, %64 : vector<32x32xf32>
    %67 = tpu.reciprocal %66 : vector<32x32xf32> -> vector<32x32xf32>
    %cst_37 = arith.constant 1.06140542 : f32
    %68 = vector.broadcast %cst_37 : f32 to vector<32x32xf32>
    %69 = arith.mulf %68, %67 : vector<32x32xf32>
    %cst_38 = arith.constant -1.45315206 : f32
    %70 = vector.broadcast %cst_38 : f32 to vector<32x32xf32>
    %71 = arith.addf %69, %70 : vector<32x32xf32>
    %72 = arith.mulf %71, %67 : vector<32x32xf32>
    %cst_39 = arith.constant 1.42141378 : f32
    %73 = vector.broadcast %cst_39 : f32 to vector<32x32xf32>
    %74 = arith.addf %72, %73 : vector<32x32xf32>
    %75 = arith.mulf %74, %67 : vector<32x32xf32>
    %cst_40 = arith.constant -0.284496725 : f32
    %76 = vector.broadcast %cst_40 : f32 to vector<32x32xf32>
    %77 = arith.addf %75, %76 : vector<32x32xf32>
    %78 = arith.mulf %77, %67 : vector<32x32xf32>
    %cst_41 = arith.constant 0.254829586 : f32
    %79 = vector.broadcast %cst_41 : f32 to vector<32x32xf32>
    %80 = arith.addf %78, %79 : vector<32x32xf32>
    %81 = arith.mulf %80, %67 : vector<32x32xf32>
    %cst_42 = arith.constant 0.000000e+00 : f32
    %82 = vector.broadcast %cst_42 : f32 to vector<32x32xf32>
    %83 = arith.subf %82, %62 : vector<32x32xf32>
    %84 = arith.mulf %83, %62 : vector<32x32xf32>
    %85 = math.exp %84 : vector<32x32xf32>
    %86 = arith.mulf %81, %85 : vector<32x32xf32>
    %cst_43 = arith.constant 1.000000e+00 : f32
    %87 = vector.broadcast %cst_43 : f32 to vector<32x32xf32>
    %88 = arith.subf %87, %86 : vector<32x32xf32>
    %cst_44 = arith.constant 0.000000e+00 : f32
    %89 = vector.broadcast %cst_44 : f32 to vector<32x32xf32>
    %90 = arith.cmpf olt, %61, %89 : vector<32x32xf32>
    %cst_45 = arith.constant 0.000000e+00 : f32
    %91 = vector.broadcast %cst_45 : f32 to vector<32x32xf32>
    %92 = arith.subf %91, %88 : vector<32x32xf32>
    %93 = arith.select %90, %92, %88 : vector<32x32xi1>, vector<32x32xf32>
    %cst_46 = arith.constant 1.000000e+00 : f32
    %94 = vector.broadcast %cst_46 : f32 to vector<32x32xf32>
    %95 = arith.addf %94, %93 : vector<32x32xf32>
    %96 = arith.mulf %59, %95 : vector<32x32xf32>
    %c0_47 = arith.constant 0 : index
    %c0_48 = arith.constant 0 : index
    %97 = vector.load %arg11[%c0_47, %c0_48] : memref<32x32xf32, #tpu.memory_space<vmem>>, vector<32x32xf32>
    %cst_49 = arith.constant dense<0.000000e+00> : vector<32x32xf32>
    %98 = tpu.matmul %96, %97, %cst_49 {dimension_numbers = #tpu.dot_dimension_numbers<[1], [0], [0], [1], [0, 0, 1, 1], [], []>} : vector<32x32xf32>, vector<32x32xf32>, vector<32x32xf32> -> vector<32x32xf32>
    %c0_50 = arith.constant 0 : index
    %c0_51 = arith.constant 0 : index
    %99 = vector.load %arg12[%c0_50, %c0_51] : memref<1x32xf32, #tpu.memory_space<vmem>>, vector<1x32xf32>
    %100 = vector.broadcast %99 : vector<1x32xf32> to vector<32x32xf32>
    %101 = arith.addf %98, %100 : vector<32x32xf32>
    %102 = vector.shape_cast %52 : vector<16x32xf32> to vector<2x8x32xf32>
    %103 = vector.shape_cast %101 : vector<32x32xf32> to vector<2x16x32xf32>
    "tpu.trace_start"() <{level = 10 : i32, message = "bld,brd->blr"}> : () -> ()
    %cst_52 = arith.constant dense<0.000000e+00> : vector<2x8x16xf32>
    %104 = tpu.matmul %102, %103, %cst_52 {dimension_numbers = #tpu.dot_dimension_numbers<[2], [2], [1], [1], [0, 0, 0, 1, 1, 1], [0], [0]>} : vector<2x8x32xf32>, vector<2x16x32xf32>, vector<2x8x16xf32> -> vector<2x8x16xf32>
    "tpu.trace_stop"() : () -> ()
    %c0_53 = arith.constant 0 : index
    %c0_54 = arith.constant 0 : index
    %c0_55 = arith.constant 0 : index
    %105 = vector.load %arg4[%c0_53, %c0_54, %c0_55] : memref<2x1x16xf32, #tpu.memory_space<vmem>>, vector<2x1x16xf32>
    %cst_56 = arith.constant 0.000000e+00 : f32
    %106 = vector.broadcast %cst_56 : f32 to vector<2x1x16xf32>
    %107 = arith.cmpf ogt, %105, %106 : vector<2x1x16xf32>
    %cst_57 = arith.constant -1.000000e+09 : f32
    %108 = vector.shape_cast %107 : vector<2x1x16xi1> to vector<2x1x16xi1>
    %109 = vector.broadcast %108 : vector<2x1x16xi1> to vector<2x8x16xi1>
    %110 = vector.broadcast %cst_57 : f32 to vector<2x8x16xf32>
    %111 = arith.select %109, %104, %110 : vector<2x8x16xi1>, vector<2x8x16xf32>
    %cst_58 = arith.constant dense<0xFF800000> : vector<2x8xf32>
    %112 = vector.multi_reduction <maximumf>, %111, %cst_58 [2] : vector<2x8x16xf32> to vector<2x8xf32>
    %113 = vector.shape_cast %112 : vector<2x8xf32> to vector<2x8x1xf32>
    %114 = vector.broadcast %113 : vector<2x8x1xf32> to vector<2x8x16xf32>
    %115 = arith.subf %111, %114 : vector<2x8x16xf32>
    %116 = math.exp %115 : vector<2x8x16xf32>
    "tpu.trace_start"() <{level = 10 : i32, message = "blr,brd->bld"}> : () -> ()
    %cst_59 = arith.constant dense<0.000000e+00> : vector<2x8x32xf32>
    %117 = tpu.matmul %116, %103, %cst_59 {dimension_numbers = #tpu.dot_dimension_numbers<[2], [1], [1], [2], [0, 0, 0, 1, 1, 2], [0], [0]>} : vector<2x8x16xf32>, vector<2x16x32xf32>, vector<2x8x32xf32> -> vector<2x8x32xf32>
    "tpu.trace_stop"() : () -> ()
    %118 = arith.mulf %102, %102 : vector<2x8x32xf32>
    %cst_60 = arith.constant dense<0.000000e+00> : vector<2x8xf32>
    %119 = vector.multi_reduction <add>, %118, %cst_60 [2] : vector<2x8x32xf32> to vector<2x8xf32>
    %120 = vector.shape_cast %119 : vector<2x8xf32> to vector<2x8x1xf32>
    %cst_61 = arith.constant 1.000000e-24 : f32
    %121 = vector.broadcast %cst_61 : f32 to vector<2x8x1xf32>
    %122 = arith.maximumf %120, %121 : vector<2x8x1xf32>
    %123 = math.rsqrt %122 : vector<2x8x1xf32>
    %124 = vector.broadcast %123 : vector<2x8x1xf32> to vector<2x8x32xf32>
    %125 = arith.mulf %102, %124 : vector<2x8x32xf32>
    %126 = arith.mulf %117, %117 : vector<2x8x32xf32>
    %cst_62 = arith.constant dense<0.000000e+00> : vector<2x8xf32>
    %127 = vector.multi_reduction <add>, %126, %cst_62 [2] : vector<2x8x32xf32> to vector<2x8xf32>
    %128 = vector.shape_cast %127 : vector<2x8xf32> to vector<2x8x1xf32>
    %cst_63 = arith.constant 1.000000e-24 : f32
    %129 = vector.broadcast %cst_63 : f32 to vector<2x8x1xf32>
    %130 = arith.maximumf %128, %129 : vector<2x8x1xf32>
    %131 = math.rsqrt %130 : vector<2x8x1xf32>
    %132 = vector.broadcast %131 : vector<2x8x1xf32> to vector<2x8x32xf32>
    %133 = arith.mulf %117, %132 : vector<2x8x32xf32>
    %134 = arith.mulf %125, %133 : vector<2x8x32xf32>
    %cst_64 = arith.constant dense<0.000000e+00> : vector<2x8xf32>
    %135 = vector.multi_reduction <add>, %134, %cst_64 [2] : vector<2x8x32xf32> to vector<2x8xf32>
    %c0_65 = arith.constant 0 : index
    %c0_66 = arith.constant 0 : index
    %136 = vector.load %arg2[%c0_65, %c0_66] : memref<2x8xf32, #tpu.memory_space<vmem>>, vector<2x8xf32>
    %137 = arith.mulf %135, %136 : vector<2x8xf32>
    %c0_67 = arith.constant 0 : index
    %c0_68 = arith.constant 0 : index
    %138 = vector.load %arg13[%c0_67, %c0_68] : memref<2x8xf32, #tpu.memory_space<vmem>>, vector<2x8xf32>
    tpu.vector_store %arg13[%c0_67, %c0_68], %137 {strides = array<i32>} : memref<2x8xf32, #tpu.memory_space<vmem>>, vector<2x8xf32>,
    return
  }
  func.func @transform_0(%arg0: i32) -> (i32, i32, i32) {
    %c0_i32 = arith.constant 0 : i32
    %c0_i32_0 = arith.constant 0 : i32
    %c0_i32_1 = arith.constant 0 : i32
    return %arg0, %c0_i32, %c0_i32_0 : i32, i32, i32
  }
  func.func @transform_1(%arg0: i32) -> (i32, i32) {
    %c0_i32 = arith.constant 0 : i32
    %c0_i32_0 = arith.constant 0 : i32
    return %arg0, %c0_i32 : i32, i32
  }
  func.func @transform_2(%arg0: i32) -> (i32, i32, i32) {
    %c0_i32 = arith.constant 0 : i32
    %c0_i32_0 = arith.constant 0 : i32
    %c0_i32_1 = arith.constant 0 : i32
    return %arg0, %c0_i32, %c0_i32_0 : i32, i32, i32
  }
  func.func @transform_3(%arg0: i32) -> (i32, i32, i32) {
    %c0_i32 = arith.constant 0 : i32
    %c0_i32_0 = arith.constant 0 : i32
    %c0_i32_1 = arith.constant 0 : i32
    return %arg0, %c0_i32, %c0_i32_0 : i32, i32, i32
  }
  func.func @transform_4(%arg0: i32) -> (i32, i32) {
    %c0_i32 = arith.constant 0 : i32
    %c0_i32_0 = arith.constant 0 : i32
    %c0_i32_1 = arith.constant 0 : i32
    return %c0_i32, %c0_i32_0 : i32, i32
  }
  func.func @transform_5(%arg0: i32) -> (i32, i32) {
    %c0_i32 = arith.constant 0 : i32
    %c0_i32_0 = arith.constant 0 : i32
    %c0_i32_1 = arith.constant 0 : i32
    return %c0_i32, %c0_i32_0 : i32, i32
  }
  func.func @transform_6(%arg0: i32) -> (i32, i32) {
    %c0_i32 = arith.constant 0 : i32
    %c0_i32_0 = arith.constant 0 : i32
    %c0_i32_1 = arith.constant 0 : i32
    return %c0_i32, %c0_i32_0 : i32, i32
  }
  func.func @transform_7(%arg0: i32) -> (i32, i32) {
    %c0_i32 = arith.constant 0 : i32
    %c0_i32_0 = arith.constant 0 : i32
    %c0_i32_1 = arith.constant 0 : i32
    return %c0_i32, %c0_i32_0 : i32, i32
  }
  func.func @transform_8(%arg0: i32) -> (i32, i32) {
    %c0_i32 = arith.constant 0 : i32
    %c0_i32_0 = arith.constant 0 : i32
    %c0_i32_1 = arith.constant 0 : i32
    return %c0_i32, %c0_i32_0 : i32, i32
  }
  func.func @transform_9(%arg0: i32) -> (i32, i32) {
    %c0_i32 = arith.constant 0 : i32
    %c0_i32_0 = arith.constant 0 : i32
    %c0_i32_1 = arith.constant 0 : i32
    return %c0_i32, %c0_i32_0 : i32, i32
  }
  func.func @transform_10(%arg0: i32) -> (i32, i32) {
    %c0_i32 = arith.constant 0 : i32
    %c0_i32_0 = arith.constant 0 : i32
    %c0_i32_1 = arith.constant 0 : i32
    return %c0_i32, %c0_i32_0 : i32, i32
  }
  func.func @transform_11(%arg0: i32) -> (i32, i32) {
    %c0_i32 = arith.constant 0 : i32
    %c0_i32_0 = arith.constant 0 : i32
    %c0_i32_1 = arith.constant 0 : i32
    return %c0_i32, %c0_i32_0 : i32, i32
  }
  func.func @transform_12(%arg0: i32) -> (i32, i32) {
    %c0_i32 = arith.constant 0 : i32
    %c0_i32_0 = arith.constant 0 : i32
    return %arg0, %c0_i32 : i32, i32
  }
}

</mosaic_0001>

<bundles_post_ra>
// kernel: tpu_custom_call.1
= control target key start
LH: loop header
LB: loop body
LE: loop exit
PB: predicated region body
PF: predicated region fallthrough
CT: control target
= control target key end

     0   :  { %17 = vsyncpa [#allocation3], 0  ;;  %s1907_s0 = inlined_call_operand.hbm [shape: f32[2,8,16], index: 0, kind: input, shape index: {}]   ;;  %s1908_s1 = inlined_call_operand.vmem [shape: f32[2,8], index: 1, kind: input, shape index: {}]   ;;  %s1909_s2 = inlined_call_operand.hbm [shape: f32[2,16,24], index: 2, kind: input, shape index: {}]   ;;  %s1910_s3 = inlined_call_operand.vmem [shape: f32[2,1,16], index: 3, kind: input, shape index: {}]   ;;  %s1911_s4 = inlined_call_operand.hbm [shape: f32[16,32], index: 4, kind: input, shape index: {}]   ;;  %s1912_s5 = inlined_call_operand.vmem [shape: f32[1,32], index: 5, kind: input, shape index: {}]   ;;  %s1913_s6 = inlined_call_operand.hbm [shape: f32[32,32], index: 6, kind: input, shape index: {}]   ;;  %s1914_s7 = inlined_call_operand.hbm [shape: f32[1,32], index: 7, kind: input, shape index: {}]   ;;  %s1915_s8 = inlined_call_operand.hbm [shape: f32[24,32], index: 8, kind: input, shape index: {}]   ;;  %s1916_s9 = inlined_call_operand.hbm [shape: f32[1,32], index: 9, kind: input, shape index: {}]   ;;  %s1917_s10 = inlined_call_operand.vmem [shape: f32[32,32], index: 10, kind: input, shape index: {}]   ;;  %s1918_s11 = inlined_call_operand.vmem [shape: f32[1,32], index: 11, kind: input, shape index: {}]   ;;  %s1919_s12 = inlined_call_operand.hbm [shape: f32[2,8], index: 12, kind: output, shape index: {}]  }
   0x1   :  { %18 = vsyncpa [#allocation6], 0 }
   0x2   :  { %19 = vsyncpa [#allocation9], 0 }
   0x3   :  { %20 = vsyncpa [#allocation12], 0 }
   0x4   :  { %21 = vsyncpa [#allocation4], 0  ;;  %s1535_s21 = smov [#allocation5]   ;;  %s1536_s23 = smov [#allocation8]  }
   0x5   :  { %s41_s22 = sshll.u32 %s1535_s21, 4  ;;  %s69_s24 = sshll.u32 %s1536_s23, 4  ;;  %s42_s22 = int_to_ptr.vmem [resolvable:$true] %s41_s22  ;;  %s1614_s24 = int_to_ptr.vmem [resolvable:$true] %s69_s24 }
   0x6   :  { %s1349_s27 = scalar_lea.hbm %s1909_s2, 512 }
   0x7   :  { %p1350_p0 = scmp.ne.s32.totalorder %s1909_s2, %s1349_s27  ;;  %p1353_p1 = scmp.lt.u32.totalorder %s1349_s27, %s1909_s2 }
   0x9   :  { %p1355_p2 = pnand %p1353_p1, %p1350_p0 }
   0xb   :  { %1358 = shalt.err (!%p1355_p2)
}
   0xc   :  { %s1359_s14 = scalar_lea.vmem %s42_s22, 512  ;;  %p1364_p4 = scmp.lt.s32.totalorder %s42_s22, %s42_s22 }
   0xd   :  { %p1360_p3 = scmp.ne.s32.totalorder %s42_s22, %s1359_s14  ;;  %p1365_p5 = scmp.lt.s32.totalorder %s1359_s14, %s1359_s14 }
   0xf   :  { %p1366_p6 = por %p1365_p5, %p1364_p4 }
  0x11   :  { %p1367_p7 = pnand %p1366_p6, %p1360_p3 }
  0x13   :  { %1370 = shalt.err (!%p1367_p7)
}
  0x14   :  { %s1537_s15 = smov 128   ;;  %s1538_s16 = smov 8  }
  0x15   :  { %47 = dma.hbm_to_vmem [thread:$0]  %s1909_s2, 512, %s42_s22, [#allocation6], %s1537_s15, %s1537_s15, %s1538_s16  }
  0x16   :  { %s1371_s21 = scalar_lea.hbm %s1913_s6, 512 }
  0x17   :  { %p1372_p8 = scmp.ne.s32.totalorder %s1913_s6, %s1371_s21  ;;  %p1375_p9 = scmp.lt.u32.totalorder %s1371_s21, %s1913_s6 }
  0x19   :  { %p1377_p10 = pnand %p1375_p9, %p1372_p8 }
  0x1b   :  { %1380 = shalt.err (!%p1377_p10)
}
  0x1c   :  { %s1381_s28 = scalar_lea.vmem %s1614_s24, 512  ;;  %p1386_p12 = scmp.lt.s32.totalorder %s1614_s24, %s1614_s24 }
  0x1d   :  { %p1382_p11 = scmp.ne.s32.totalorder %s1614_s24, %s1381_s28  ;;  %p1387_p13 = scmp.lt.s32.totalorder %s1381_s28, %s1381_s28 }
  0x1f   :  { %p1388_p0 = por %p1387_p13, %p1386_p12 }
  0x21   :  { %p1389_p1 = pnand %p1388_p0, %p1382_p11 }
  0x23   :  { %1392 = shalt.err (!%p1389_p1)
}
  0x24   :  { %75 = dma.hbm_to_vmem [thread:$0]  %s1913_s6, 512, %s1614_s24, [#allocation9], %s1537_s15, %s1537_s15, %s1538_s16  }
  0x25   :  { %s1539_s29 = smov [#allocation11]   ;;  %s1540_s13 = smov [#allocation2]  }
  0x26   :  { %s91_s30 = sshll.u32 %s1539_s29, 4  ;;  %s27_s14 = sshll.u32 %s1540_s13, 4  ;;  %s92_s30 = int_to_ptr.vmem [resolvable:$true] %s91_s30  ;;  %s1651_s14 = int_to_ptr.vmem [resolvable:$true] %s27_s14 }
  0x27   :  { %s1393_s19 = scalar_lea.hbm %s1915_s8, 384 }
  0x28   :  { %p1394_p2 = scmp.ne.s32.totalorder %s1915_s8, %s1393_s19  ;;  %p1397_p3 = scmp.lt.u32.totalorder %s1393_s19, %s1915_s8 }
  0x2a   :  { %p1399_p4 = pnand %p1397_p3, %p1394_p2 }
  0x2c   :  { %1402 = shalt.err (!%p1399_p4)
}
  0x2d   :  { %s1403_s6 = scalar_lea.vmem %s92_s30, 384  ;;  %p1408_p6 = scmp.lt.s32.totalorder %s92_s30, %s92_s30 }
  0x2e   :  { %p1404_p5 = scmp.ne.s32.totalorder %s92_s30, %s1403_s6  ;;  %p1409_p7 = scmp.lt.s32.totalorder %s1403_s6, %s1403_s6 }
  0x30   :  { %p1410_p8 = por %p1409_p7, %p1408_p6 }
  0x32   :  { %p1411_p9 = pnand %p1410_p8, %p1404_p5 }
  0x34   :  { %1414 = shalt.err (!%p1411_p9)
}
  0x35   :  { %97 = dma.hbm_to_vmem [thread:$0]  %s1915_s8, 384, %s92_s30, [#allocation12], %s1537_s15, %s1537_s15, %s1538_s16  }
  0x36   :  { %s1415_s2 = scalar_lea.hbm %s1907_s0, 256 }
  0x37   :  { %p1416_p10 = scmp.ne.s32.totalorder %s1907_s0, %s1415_s2  ;;  %p1419_p11 = scmp.lt.u32.totalorder %s1415_s2, %s1907_s0 }
  0x39   :  { %p1421_p12 = pnand %p1419_p11, %p1416_p10 }
  0x3b   :  { %1424 = shalt.err (!%p1421_p12)
}
  0x3c   :  { %s1425_s18 = scalar_lea.vmem %s1651_s14, 256  ;;  %p1430_p0 = scmp.lt.s32.totalorder %s1651_s14, %s1651_s14 }
  0x3d   :  { %p1426_p13 = scmp.ne.s32.totalorder %s1651_s14, %s1425_s18  ;;  %p1431_p1 = scmp.lt.s32.totalorder %s1425_s18, %s1425_s18 }
  0x3f   :  { %p1432_p2 = por %p1431_p1, %p1430_p0 }
  0x41   :  { %p1433_p3 = pnand %p1432_p2, %p1426_p13 }
  0x43   :  { %1436 = shalt.err (!%p1433_p3)
}
  0x44   :  { %33 = dma.hbm_to_vmem [thread:$0]  %s1907_s0, 256, %s1651_s14, [#allocation3], %s1537_s15, %s1537_s15, %s1538_s16  }
  0x45   :  { %s1541_s19 = smov [#allocation7]   ;;  %s1542_s21 = smov [#allocation10]  }
  0x46   :  { %s55_s20 = sshll.u32 %s1541_s19, 4  ;;  %s82_s23 = sshll.u32 %s1542_s21, 4  ;;  %s56_s20 = int_to_ptr.vmem [resolvable:$true] %s55_s20  ;;  %s83_s23 = int_to_ptr.vmem [resolvable:$true] %s82_s23 }
  0x47   :  { %s1437_s24 = scalar_lea.hbm %s1911_s4, 256 }
  0x48   :  { %p1438_p4 = scmp.ne.s32.totalorder %s1911_s4, %s1437_s24  ;;  %p1441_p5 = scmp.lt.u32.totalorder %s1437_s24, %s1911_s4 }
  0x4a   :  { %p1443_p6 = pnand %p1441_p5, %p1438_p4 }
  0x4c   :  { %1446 = shalt.err (!%p1443_p6)
}
  0x4d   :  { %s1447_s0 = scalar_lea.vmem %s56_s20, 256  ;;  %p1452_p8 = scmp.lt.s32.totalorder %s56_s20, %s56_s20 }
  0x4e   :  { %p1448_p7 = scmp.ne.s32.totalorder %s56_s20, %s1447_s0  ;;  %p1453_p9 = scmp.lt.s32.totalorder %s1447_s0, %s1447_s0 }
  0x50   :  { %p1454_p10 = por %p1453_p9, %p1452_p8 }
  0x52   :  { %p1455_p11 = pnand %p1454_p10, %p1448_p7 }
  0x54   :  { %1458 = shalt.err (!%p1455_p11)
}
  0x55   :  { %61 = dma.hbm_to_vmem [thread:$0]  %s1911_s4, 256, %s56_s20, [#allocation6], %s1537_s15, %s1537_s15, %s1538_s16  }
  0x56   :  { %s1459_s17 = scalar_lea.hbm %s1914_s7, 16 }
  0x57   :  { %p1460_p12 = scmp.ne.s32.totalorder %s1914_s7, %s1459_s17  ;;  %p1463_p13 = scmp.lt.u32.totalorder %s1459_s17, %s1914_s7 }
  0x59   :  { %p1465_p0 = pnand %p1463_p13, %p1460_p12 }
  0x5b   :  { %1468 = shalt.err (!%p1465_p0)
}
  0x5c   :  { %s1469_s21 = scalar_lea.vmem %s83_s23, 16  ;;  %s1473_s25 = scalar_lea.vmem %s83_s23, 32 }
  0x5d   :  { %p1470_p1 = scmp.ne.s32.totalorder %s83_s23, %s1469_s21  ;;  %p1474_p2 = scmp.lt.s32.totalorder %s83_s23, %s83_s23 }
  0x5e   :  { %p1475_p3 = scmp.lt.s32.totalorder %s1473_s25, %s1469_s21 }
  0x60   :  { %p1476_p4 = por %p1475_p3, %p1474_p2 }
  0x62   :  { %p1477_p5 = pnand %p1476_p4, %p1470_p1 }
  0x64   :  { %1480 = shalt.err (!%p1477_p5)
}
  0x65   :  { %85 = dma.hbm_to_vmem [thread:$0]  %s1914_s7, 16, %s83_s23, [#allocation9]  }
  0x66   :  { %s1543_s16 = smov [#allocation13]   ;;  %s1481_s26 = scalar_lea.hbm %s1916_s9, 16 }
  0x67   :  { %s104_s20 = sshll.u32 %s1543_s16, 4  ;;  %p1482_p6 = scmp.ne.s32.totalorder %s1916_s9, %s1481_s26  ;;  %s105_s20 = int_to_ptr.vmem [resolvable:$true] %s104_s20 }
  0x68   :  { %p1485_p7 = scmp.lt.u32.totalorder %s1481_s26, %s1916_s9 }
  0x6a   :  { %p1487_p8 = pnand %p1485_p7, %p1482_p6 }
  0x6c   :  { %1490 = shalt.err (!%p1487_p8)
}
  0x6d   :  { %s1491_s14 = scalar_lea.vmem %s105_s20, 16  ;;  %s1495_s7 = scalar_lea.vmem %s105_s20, 32 }
  0x6e   :  { %p1492_p9 = scmp.ne.s32.totalorder %s105_s20, %s1491_s14  ;;  %p1496_p10 = scmp.lt.s32.totalorder %s105_s20, %s105_s20 }
  0x6f   :  { %p1497_p11 = scmp.lt.s32.totalorder %s1495_s7, %s1491_s14 }
  0x71   :  { %p1498_p12 = por %p1497_p11, %p1496_p10 }
  0x73   :  { %p1499_p13 = pnand %p1498_p12, %p1492_p9 }
  0x75   :  { %1502 = shalt.err (!%p1499_p13)
}
  0x76   :  { %107 = dma.hbm_to_vmem [thread:$0]  %s1916_s9, 16, %s105_s20, [#allocation12]  }
  0x77   :  { %1525 = dma.done.wait [#allocation3], 256  }
  0x78   :  { %1526 = vsyncadd [#allocation3], 4294967040 }
  0x79   :  { %1527 = dma.done.wait [#allocation6], 768  }
  0x7a   :  { %1528 = vsyncadd [#allocation6], 4294966528 }
  0x7b   :  { %1529 = dma.done.wait [#allocation9], 528  }
  0x7c   :  { %1530 = vsyncadd [#allocation9], 4294966768 }
  0x7d   :  { %1531 = dma.done.wait [#allocation12], 400  }
  0x7e   :  { %1532 = vsyncadd [#allocation12], 4294966896  ;;  %vm148_vm0 = vcmask 130048   ;;  %v139_v0 = vld [vmem:[#allocation7] sm:$0xff]  ;;  %v140_v1 = vld [vmem:[#allocation7 + $0x8] sm:$0xff]  ;;  %vm385_vm1 = vcmask 195584  }
  0x7f   :  { %v133_v2 = vld [vmem:[#allocation2] sm:$0xff]  ;;  %v1259_v3 = vpack.c.bf16 %v140_v1, %v139_v0  ;;  %v376_v5 = vld [vmem:[#allocation11 + $0x8] sm:$0xff]  ;;  %v377_v9 = vld [vmem:[#allocation11 + $0x10] sm:$0xff]  ;;  %vm293_vm4 = vcmask 261120   ;;  %vm1545_vm9 = vmmov 0   ;;  %s1548_s6 = smov [#allocation14]  }
  0x80   :  { %1191 = vmatprep.mubr.msk.f32.mxu0 %vm148_vm0, %v133_v2  ;;  %v375_v4 = vld [vmem:[#allocation11] sm:$0xff]  ;;  %v135_v8 = vld [vmem:[#allocation5] sm:$0xff]  ;;  %v136_v10 = vld [vmem:[#allocation5 + $0x8] sm:$0xff]  ;;  %vm1103_vm15 = vcmask 1041409  }
  0x81   :  { %v1271_v6 = vpack.c.bf16 %v376_v5, %v375_v4  ;;  %1260 = vmatprep.subr.bf16.mxu0 %v1259_v3  ;;  %v134_v7 = vld [vmem:[#allocation2 + $0x8] sm:$0xff]  ;;  %v137_v11 = vld [vmem:[#allocation5 + $0x10] sm:$0xff]  ;;  %v284_v16 = vld [vmem:[#allocation8 + $0x10] sm:$0xff] }
  0x82   :  { %1262 = vmatpush3.bf16.msra.mxu0 %v1259_v3  ;;  %v138_v12 = vld [vmem:[#allocation5 + $0x18] sm:$0xff]  ;;  %v282_v13 = vld [vmem:[#allocation8] sm:$0xff]  ;;  %v285_v17 = vld [vmem:[#allocation8 + $0x18] sm:$0xff] }
  0x83   :  { %1272 = vmatprep.subr.bf16.mxu0 %v1271_v6  ;;  %v283_v14 = vld [vmem:[#allocation8 + $0x8] sm:$0xff]  ;;  %v1267_v18 = vpack.c.bf16 %v285_v17, %v284_v16  ;;  %v587_v19 = vld [vmem:[%s1917_s10] sm:$0xff]  ;;  %v1132_v29 = vld [vmem:[#allocation13] ss:$0 sm:$0xff] }
  0x84   :  { %v1263_v15 = vpack.c.bf16 %v283_v14, %v282_v13  ;;  %v588_v20 = vld [vmem:[%s1917_s10 + $0x8] sm:$0xff]  ;;  %v1126_v22 = vld [vmem:[%s1912_s5] ss:$0 sm:$0xff]  ;;  %vm1285_vm10 = vmpackc.low %vm293_vm4, %vm293_vm4 }
  0x85   :  { %1192 = vmatmul.mubr.msk.f32.vlgmr.msra.gmra.mrb[0].mxu0 %vm148_vm0, %v134_v7  ;;  %v1735_v21 = vpack.c.bf16 %v588_v20, %v587_v19 }
  0x86   :  { %1274 = vmatpush3.bf16.msra.mxu0 %v1271_v6  ;;  %1211 = vmatprep.mubr.msk.f32.mxu0 %vm385_vm1, %v135_v8 }
  0x87   :  { %1209 = vmatprep.subr.mxu0 %v377_v9  ;;  %1264 = vmatprep.subr.bf16.mxu1 %v1263_v15 }
  0x88   :  { %1266 = vmatpush3.bf16.msra.mxu1 %v1263_v15 }
  0x89   :  { %1268 = vmatprep.subr.bf16.mxu1 %v1267_v18 }
  0x8a   :  { %1210 = vmatpush3.msra.mxu0 %v377_v9 }
  0x8b   :  { %1212 = vmatmul.mubr.msk.f32.vlgmr.msra.gmra.mrb[2].mxu0 %vm385_vm1, %v136_v10 }
  0x8c   :  { %1214 = vmatprep.mubr.msk.f32.mxu0 %vm385_vm1, %v137_v11  ;;  %1270 = vmatpush3.bf16.msra.mxu1 %v1267_v18 }
  0x8d   :  { %1276 = vmatprep.subr.bf16.mxu1 %v1735_v21 }
  0x8f   :  { %1215 = vmatmul.mubr.msk.f32.gmra.mrb[4].mxu0 %vm385_vm1, %v138_v12 }
 0x158   :  { %v1193_v23 = vpop.f32.mrb[0].mxu0 }
 0x159   :  { %v1741_v24 = vadd.f32 %v1193_v23, %v1126_v22  ;;  %v221_v25 = vpop.f32.mrb[1].mxu0 }
 0x15a   :  { %v1743_v26 = vadd.f32 %v1126_v22, %v221_v25 }
 0x15b   :  { %v1746_v27 = vmul.f32 0.70710677, %v1741_v24 }
 0x15c   :  { %v1749_v28 = vmul.f32 0.70710677, %v1743_v26 }
 0x15d   :  { %v235_v30 = vand.u32 2147483647, %v1746_v27  ;;  %vm273_vm2 = vcmp.lt.f32.partialorder %v1746_v27, 0.0  ;;  %v589_v27 = vld [vmem:[%s1917_s10 + $0x10] sm:$0xff] }
 0x15e   :  { %v234_v31 = vand.u32 2147483647, %v1749_v28  ;;  %v1213_v32 = vpop.f32.mrb[2].mxu0  ;;  %vm272_vm3 = vcmp.lt.f32.partialorder %v1749_v28, 0.0 }
 0x15f   :  { %v237_v33 = vmul.f32 0.3275911, %v235_v30  ;;  %v1753_v34 = vadd.f32 %v1213_v32, %v1132_v29  ;;  %v464_v35 = vpop.f32.mrb[3].mxu0  ;;  %v261_v54 = vsub.f32 0.0, %v235_v30 }
 0x160   :  { %v236_v36 = vmul.f32 0.3275911, %v234_v31  ;;  %v1755_v37 = vadd.f32 %v1132_v29, %v464_v35  ;;  %v260_v56 = vsub.f32 0.0, %v234_v31 }
 0x161   :  { %v239_v38 = vadd.f32 1.0, %v237_v33  ;;  %v1758_v39 = vmul.f32 0.70710677, %v1753_v34  ;;  %v263_v61 = vmul.f32 %v261_v54, %v235_v30 }
 0x162   :  { %v238_v40 = vadd.f32 1.0, %v236_v36  ;;  %v1761_v41 = vmul.f32 0.70710677, %v1755_v37  ;;  %v1216_v42 = vpop.f32.mrb[4].mxu0  ;;  %v262_v1 = vmul.f32 %v260_v56, %v234_v31 }
 0x163   :  { %1313 = vrcp.f32 %v239_v38  ;;  %v492_v43 = vand.u32 2147483647, %v1758_v39  ;;  %v474_v44 = vpop.f32.mrb[5].mxu0  ;;  %v1765_v47 = vadd.f32 %v1216_v42, %v1132_v29  ;;  %v266_v7 = vmul.f32 1.442695, %v263_v61 }
 0x164   :  { %1315 = vrcp.f32 %v238_v40  ;;  %v491_v45 = vand.u32 2147483647, %v1761_v41  ;;  %v1767_v49 = vadd.f32 %v1132_v29, %v474_v44  ;;  %v264_v10 = vmul.f32 1.442695, %v262_v1 }
 0x165   :  { %v496_v46 = vmul.f32 0.3275911, %v492_v43  ;;  %v1770_v51 = vmul.f32 0.70710677, %v1765_v47  ;;  %v544_v3 = vsub.f32 0.0, %v492_v43  ;;  %vm568_vm5 = vcmp.lt.f32.partialorder %v1758_v39, 0.0 }
 0x166   :  { %v495_v48 = vmul.f32 0.3275911, %v491_v45  ;;  %v1773_v53 = vmul.f32 0.70710677, %v1767_v49  ;;  %v543_v6 = vsub.f32 0.0, %v491_v45  ;;  %vm567_vm6 = vcmp.lt.f32.partialorder %v1761_v41, 0.0 }
 0x167   :  { %v500_v50 = vadd.f32 1.0, %v496_v46  ;;  %v494_v55 = vand.u32 2147483647, %v1770_v51  ;;  %v548_v12 = vmul.f32 %v544_v3, %v492_v43  ;;  %v484_v41 = vmul.f32 0.5, %v1753_v34 }
 0x168   :  { %v499_v52 = vadd.f32 1.0, %v495_v48  ;;  %v493_v57 = vand.u32 2147483647, %v1773_v53  ;;  %v547_v17 = vmul.f32 %v543_v6, %v491_v45  ;;  %vm570_vm7 = vcmp.lt.f32.partialorder %v1770_v51, 0.0 }
 0x169   :  { %1317 = vrcp.f32 %v500_v50  ;;  %v498_v58 = vmul.f32 0.3275911, %v494_v55  ;;  %v546_v19 = vsub.f32 0.0, %v494_v55  ;;  %v553_v29 = vmul.f32 1.442695, %v548_v12 }
 0x16a   :  { %1319 = vrcp.f32 %v499_v52  ;;  %v497_v59 = vmul.f32 0.3275911, %v493_v57  ;;  %v545_v25 = vsub.f32 0.0, %v493_v57  ;;  %v551_v35 = vmul.f32 1.442695, %v547_v17 }
 0x16b   :  { %v502_v62 = vadd.f32 1.0, %v498_v58  ;;  %v550_v40 = vmul.f32 %v546_v19, %v494_v55  ;;  %vm569_vm8 = vcmp.lt.f32.partialorder %v1773_v53, 0.0  ;;  %v1544_v51 = vmov 0.0|0.0  }
 0x16c   :  { %v501_v2 = vadd.f32 1.0, %v497_v59  ;;  %v549_v48 = vmul.f32 %v545_v25, %v493_v57  ;;  %1283 = vmatprep.subr.bf16.mxu0 %v1544_v51  ;;  %v1546_v53 = vmov 0.0  }
 0x16d   :  { %v1314_v60 = vpop.eup %1313  ;;  %1321 = vrcp.f32 %v502_v62  ;;  %v557_v61 = vmul.f32 1.442695, %v550_v40  ;;  %1235 = vmatprep.mubr.msk.f32.mxu0 %vm1545_vm9, %v1546_v53 }
 0x16e   :  { %v1777_v63 = vpop.eup %1315  ;;  %v243_v0 = vmul.f32 1.0614054, %v1314_v60  ;;  %1323 = vrcp.f32 %v501_v2  ;;  %v555_v3 = vmul.f32 1.442695, %v549_v48 }
 0x16f   :  { %v242_v4 = vmul.f32 1.0614054, %v1777_v63  ;;  %1325 = vpow2.f32 %v266_v7 }
 0x170   :  { %v245_v5 = vadd.f32 -1.4531521, %v243_v0  ;;  %1327 = vpow2.f32 %v264_v10 }
 0x171   :  { %v244_v8 = vadd.f32 -1.4531521, %v242_v4  ;;  %1329 = vpow2.f32 %v553_v29 }
 0x172   :  { %v247_v9 = vmul.f32 %v1314_v60, %v245_v5  ;;  %1331 = vpow2.f32 %v551_v35 }
 0x173   :  { %v1780_v11 = vpop.eup %1317  ;;  %v246_v13 = vmul.f32 %v1777_v63, %v244_v8  ;;  %1333 = vpow2.f32 %v557_v61 }
 0x174   :  { %v1783_v14 = vpop.eup %1319  ;;  %v249_v15 = vadd.f32 1.4214138, %v247_v9  ;;  %v508_v16 = vmul.f32 1.0614054, %v1780_v11  ;;  %1335 = vpow2.f32 %v555_v3 }
 0x175   :  { %v507_v18 = vmul.f32 1.0614054, %v1783_v14  ;;  %v248_v20 = vadd.f32 1.4214138, %v246_v13 }
 0x176   :  { %v251_v22 = vmul.f32 %v1314_v60, %v249_v15  ;;  %v512_v23 = vadd.f32 -1.4531521, %v508_v16 }
 0x177   :  { %v511_v30 = vadd.f32 -1.4531521, %v507_v18  ;;  %v250_v31 = vmul.f32 %v1777_v63, %v248_v20  ;;  %v1789_v36 = vpop.eup %1321 }
 0x178   :  { %v253_v32 = vadd.f32 -0.28449672, %v251_v22  ;;  %v516_v33 = vmul.f32 %v1780_v11, %v512_v23  ;;  %v1792_v43 = vpop.eup %1323  ;;  %v510_v46 = vmul.f32 1.0614054, %v1789_v36 }
 0x179   :  { %v515_v38 = vmul.f32 %v1783_v14, %v511_v30  ;;  %v252_v42 = vadd.f32 -0.28449672, %v250_v31  ;;  %v509_v52 = vmul.f32 1.0614054, %v1792_v43  ;;  %v1326_v4 = vpop.eup %1325 }
 0x17a   :  { %v255_v44 = vmul.f32 %v1314_v60, %v253_v32  ;;  %v520_v45 = vadd.f32 1.4214138, %v516_v33  ;;  %v514_v59 = vadd.f32 -1.4531521, %v510_v46  ;;  %v1328_v8 = vpop.eup %1327  ;;  %v230_v46 = vmul.f32 0.5, %v1743_v26 }
 0x17b   :  { %v519_v50 = vadd.f32 1.4214138, %v515_v38  ;;  %v254_v54 = vmul.f32 %v1777_v63, %v252_v42  ;;  %v513_v62 = vadd.f32 -1.4531521, %v509_v52  ;;  %v1330_v29 = vpop.eup %1329  ;;  %v231_v52 = vmul.f32 0.5, %v1741_v24 }
 0x17c   :  { %v257_v56 = vadd.f32 0.2548296, %v255_v44  ;;  %v524_v58 = vmul.f32 %v1780_v11, %v520_v45  ;;  %v518_v57 = vmul.f32 %v1789_v36, %v514_v59  ;;  %v1332_v33 = vpop.eup %1331 }
 0x17d   :  { %v523_v55 = vmul.f32 %v1783_v14, %v519_v50  ;;  %v256_v0 = vadd.f32 0.2548296, %v254_v54  ;;  %v517_v6 = vmul.f32 %v1792_v43, %v513_v62  ;;  %v1334_v62 = vpop.eup %1333 }
 0x17e   :  { %v259_v1 = vmul.f32 %v1314_v60, %v257_v56  ;;  %v528_v2 = vadd.f32 -0.28449672, %v524_v58  ;;  %v522_v12 = vadd.f32 1.4214138, %v518_v57 }
 0x17f   :  { %v527_v5 = vadd.f32 -0.28449672, %v523_v55  ;;  %v258_v7 = vmul.f32 %v1777_v63, %v256_v0  ;;  %v521_v15 = vadd.f32 1.4214138, %v517_v6 }
 0x180   :  { %v269_v9 = vmul.f32 %v1326_v4, %v259_v1  ;;  %v532_v10 = vmul.f32 %v1780_v11, %v528_v2  ;;  %v526_v18 = vmul.f32 %v1789_v36, %v522_v12  ;;  %v1336_v2 = vpop.eup %1335 }
 0x181   :  { %v531_v13 = vmul.f32 %v1783_v14, %v527_v5  ;;  %v268_v60 = vmul.f32 %v1328_v8, %v258_v7  ;;  %v525_v20 = vmul.f32 %v1792_v43, %v521_v15 }
 0x182   :  { %v271_v16 = vsub.f32 1.0, %v269_v9  ;;  %v536_v17 = vadd.f32 0.2548296, %v532_v10  ;;  %v530_v25 = vadd.f32 -0.28449672, %v526_v18 }
 0x183   :  { %v535_v19 = vadd.f32 0.2548296, %v531_v13  ;;  %v270_v22 = vsub.f32 1.0, %v268_v60  ;;  %v529_v31 = vadd.f32 -0.28449672, %v525_v20  ;;  %v486_v60 = vmul.f32 0.5, %v1765_v47 }
 0x184   :  { %v275_v63 = vsub.f32 0.0, %v271_v16  ;;  %v540_v23 = vmul.f32 %v1780_v11, %v536_v17  ;;  %v534_v40 = vmul.f32 %v1789_v36, %v530_v25  ;;  %v1129_v47 = vld [vmem:[#allocation10] ss:$0 sm:$0xff] }
 0x185   :  { %v539_v30 = vmul.f32 %v1783_v14, %v535_v19  ;;  %v274_v32 = vsub.f32 0.0, %v270_v22  ;;  %v533_v45 = vmul.f32 %v1792_v43, %v529_v31  ;;  %v590_v14 = vld [vmem:[%s1917_s10 + $0x18] sm:$0xff] }
 0x186   :  { %v277_v35 = vsel %vm273_vm2, %v275_v63, %v271_v16  ;;  %v560_v38 = vmul.f32 %v1330_v29, %v540_v23  ;;  %v538_v28 = vadd.f32 0.2548296, %v534_v40  ;;  %v1279_v61 = vpack.c.bf16 %v590_v14, %v589_v27  ;;  %v853_v27 = vld [vmem:[%s1910_s3] sm:$0x1] }
 0x187   :  { %v279_v42 = vadd.f32 1.0, %v277_v35  ;;  %v559_v44 = vmul.f32 %v1332_v33, %v539_v30  ;;  %v276_v11 = vsel %vm272_vm3, %v274_v32, %v270_v22  ;;  %v537_v56 = vadd.f32 0.2548296, %v533_v45  ;;  %v1137_v22 = vld [vmem:[%s1918_s11] ss:$0 sm:$0xff] }
 0x188   :  { %v564_v48 = vsub.f32 1.0, %v560_v38  ;;  %v278_v50 = vadd.f32 1.0, %v276_v11  ;;  %v542_v59 = vmul.f32 %v1789_v36, %v538_v28  ;;  %v483_v36 = vmul.f32 0.5, %v1755_v37 }
 0x189   :  { %v563_v54 = vsub.f32 1.0, %v559_v44  ;;  %v281_v0 = vmul.f32 %v279_v42, %v231_v52  ;;  %v541_v26 = vmul.f32 %v1792_v43, %v537_v56  ;;  %v1547_v45 = vmov 0  }
 0x18a   :  { %v572_v58 = vsub.f32 0.0, %v564_v48  ;;  %v280_v55 = vmul.f32 %v278_v50, %v230_v46  ;;  %v562_v24 = vmul.f32 %v1334_v62, %v542_v59  ;;  %1311 = vset.pattern.permute.xlu1 %v1547_v45  ;;  %1312 = vset.pattern.permute.xlu0 %v1547_v45  ;;  %v859_v11 = vlaneseq  ;;  %v854_v46 = vld [vmem:[%s1910_s3 + $0x1] sm:$0x1] }
 0x18b   :  { %v571_v1 = vsub.f32 0.0, %v563_v54  ;;  %v561_v4 = vmul.f32 %v1336_v2, %v541_v26  ;;  %vm855_vm11 = vcmp.gt.f32.partialorder %v853_v27, 0.0  ;;  %vm856_vm12 = vcmp.gt.f32.partialorder %v854_v46, 0.0 }
 0x18c   :  { %v576_v57 = vsel %vm568_vm5, %v572_v58, %v564_v48  ;;  %1202 = vmatprep.mubr.msk.f32.mxu1 %vm293_vm4, %v280_v55  ;;  %v566_v6 = vsub.f32 1.0, %v562_v24  ;;  %v1866_v14 = vshrl.u32 %v859_v11, 7  ;;  %v857_v28 = vsel %vm855_vm11, 1, %v1547_v45 }
 0x18d   :  { %v575_v3 = vsel %vm567_vm6, %v571_v1, %v563_v54  ;;  %1203 = vmatmul.mubr.msk.f32.vlgmr.msra.gmra.mrb[0].mxu1 %vm293_vm4, %v281_v0  ;;  %v580_v39 = vadd.f32 1.0, %v576_v57  ;;  %v565_v7 = vsub.f32 1.0, %v561_v4  ;;  %v858_v52 = vsel %vm856_vm12, 1, %v1547_v45 }
 0x18e   :  { %v579_v5 = vadd.f32 1.0, %v575_v3  ;;  %1278 = vmatpush3.bf16.msra.mxu1 %v1735_v21  ;;  %v574_v8 = vsub.f32 0.0, %v566_v6  ;;  %v485_v21 = vmul.f32 0.5, %v1767_v49  ;;  %v1872_v48 = vsub.s32 0, %v1866_v14 }
 0x18f   :  { %1280 = vmatprep.subr.bf16.mxu1 %v1279_v61  ;;  %v573_v9 = vsub.f32 0.0, %v565_v7  ;;  %v584_v37 = vmul.f32 %v580_v39, %v484_v41  ;;  %v1094_v45 = vand.u32 127, %v859_v11 }
 0x190   :  { %v583_v43 = vmul.f32 %v579_v5, %v483_v36  ;;  %v578_v10 = vsel %vm570_vm7, %v574_v8, %v566_v6  ;;  %v862_v50 = vrot.slane %v857_v28, %v1872_v48  ;;  %v866_v54 = vrot.slane %v858_v52, %v1872_v48 }
 0x191   :  { %v582_v12 = vadd.f32 1.0, %v578_v10  ;;  %v577_v13 = vsel %vm569_vm8, %v573_v9, %v565_v7  ;;  %v1097_v46 = vsub.s32 %v1094_v45, %v1866_v14 }
 0x192   :  { %1282 = vmatpush3.bf16.msra.mxu1 %v1279_v61  ;;  %1225 = vmatprep.mubr.msk.f32.mxu1 %vm293_vm4, %v583_v43  ;;  %v581_v15 = vadd.f32 1.0, %v577_v13  ;;  %vm867_vm13 = vcmp.eq.s32.totalorder %v862_v50, 1  ;;  %vm868_vm14 = vcmp.eq.s32.totalorder %v866_v54, 1 }
 0x193   :  { %v586_v16 = vmul.f32 %v582_v12, %v486_v60  ;;  %1287 = vmatprep.subr.bf16.mxu1 %v1544_v51 }
 0x194   :  { %v585_v34 = vmul.f32 %v581_v15, %v485_v21 }
 0x195   :  { %1226 = vmatmul.mubr.msk.f32.vlgmr.msra.gmra.mrb[2].mxu1 %vm293_vm4, %v584_v37 }
 0x196   :  { %1228 = vmatprep.mubr.msk.f32.mxu1 %vm293_vm4, %v585_v34 }
 0x199   :  { %1229 = vmatmul.mubr.msk.f32.gmra.mrb[4].mxu1 %vm293_vm4, %v586_v16 }
 0x19a   :  { %1242 = vmatprep.mubr.msk.f32.mxu1 %vm1545_vm9, %v1546_v53 }
 0x260   :  { %v1204_v49 = vpop.f32.mrb[0].mxu1 }
 0x261   :  { %v366_v17 = vpop.f32.mrb[1].mxu1  ;;  %v1841_v18 = vadd.f32 %v1204_v49, %v1129_v47 }
 0x262   :  { %v1843_v19 = vadd.f32 %v1129_v47, %v366_v17 }
 0x263   :  { %v1030_v23 = vmul.f32 %v1841_v18, %v1841_v18 }
 0x264   :  { %v1029_v20 = vmul.f32 %v1843_v19, %v1843_v19 }
 0x265   :  { %v1034_v32 = vsel %vm293_vm4, %v1030_v23, 0.0 }
 0x266   :  { %v1031_v63 = vsel %vm293_vm4, %v1029_v20, 0.0 }
 0x267   :  { %1032 = vadd.xlane.f32.xlu1 %v1031_v63 }
 0x268   :  { %v1227_v25 = vpop.f32.mrb[2].mxu1 }
 0x269   :  { %v682_v29 = vadd.f32 %v1227_v25, %v1137_v22  ;;  %v676_v30 = vpop.f32.mrb[3].mxu1 }
 0x26a   :  { %v677_v31 = vadd.f32 %v1137_v22, %v676_v30 }
 0x26b   :  { %1035 = vadd.xlane.f32.xlu1 %v1034_v32 }
 0x26c   :  { %v1284_v33 = vpack.c.bf16 %v682_v29, %v677_v31  ;;  %v1230_v35 = vpop.f32.mrb[4].mxu1  ;;  %v1076_v31 = vsub.s32 1, %v1866_v14 }
 0x26d   :  { %v692_v38 = vadd.f32 %v1230_v35, %v1137_v22  ;;  %v686_v40 = vpop.f32.mrb[5].mxu1 }
 0x26e   :  { %v687_v42 = vadd.f32 %v1137_v22, %v686_v40  ;;  %1286 = vmatpush3.bf16.xpose.msk.msra.mxu0 %vm1285_vm10, %v1284_v33 }
 0x26f   :  { %1291 = vmatprep.subr.bf16.mxu0 %v1544_v51 }
 0x270   :  { %v1288_v44 = vpack.c.bf16 %v692_v38, %v687_v42 }
 0x272   :  { %1290 = vmatpush3.bf16.xpose.msk.msra.mxu1 %vm1285_vm10, %v1288_v44 }
 0x275   :  { %1236 = vmatmul.mubr.msk.f32.vlgmr.msra.gmra.mrb[6].mxu0 %vm293_vm4, %v1843_v19 }
 0x276   :  { %1293 = vmatpush3.bf16.msra.mxu0 %v1284_v33  ;;  %1249 = vmatprep.mubr.msk.f32.mxu0 %vm1545_vm9, %v1546_v53 }
 0x277   :  { %1294 = vmatprep.subr.bf16.mxu0 %v1544_v51 }
 0x279   :  { %1243 = vmatmul.mubr.msk.f32.vlgmr.msra.gmra.mrb[6].mxu1 %vm293_vm4, %v1841_v18 }
 0x2f4   :  { %v1033_v37 = vpop.xlane.xlu1 %1032 }
 0x2f5   :  { %v1037_v12 = vmax.f32 %v1033_v37, 1e-24 }
 0x2f8   :  { %v1036_v13 = vpop.xlane.xlu1 %1035 }
 0x2f9   :  { %v1038_v15 = vmax.f32 %v1036_v13, 1e-24 }
 0x348   :  { %v770_v56 = vpop.f32.mrb[6].mxu0 }
 0x349   :  { %v869_v58 = vsel %vm867_vm13, %v770_v56, -1e+09  ;;  %v1237_v59 = vpop.f32.mrb[7].mxu0 }
 0x34a   :  { %v871_v55 = vsel %vm148_vm0, %v869_v58, -inf }
 0x34b   :  { %872 = vmax.xlane.f32.xlu0 %v871_v55 }
 0x34c   :  { %v849_v61 = vpop.f32.mrb[6].mxu1 }
 0x34d   :  { %v870_v62 = vsel %vm868_vm14, %v849_v61, -1e+09  ;;  %v1244_v0 = vpop.f32.mrb[7].mxu1 }
 0x34e   :  { %v874_v1 = vsel %vm148_vm0, %v870_v62, -inf }
 0x34f   :  { %875 = vmax.xlane.f32.xlu0 %v874_v1 }
 0x3d8   :  { %v873_v26 = vpop.xlane.xlu0 %872 }
 0x3d9   :  { %v877_v2 = vsub.f32 %v869_v58, %v873_v26 }
 0x3db   :  { %v879_v57 = vmul.f32 1.442695, %v877_v2 }
 0x3dc   :  { %v876_v24 = vpop.xlane.xlu0 %875 }
 0x3dd   :  { %1337 = vpow2.f32 %v879_v57  ;;  %v878_v3 = vsub.f32 %v870_v62, %v876_v24 }
 0x3df   :  { %v881_v4 = vmul.f32 1.442695, %v878_v3 }
 0x3e1   :  { %1339 = vpow2.f32 %v881_v4 }
 0x3e2   :  { %1341 = vrsqrt.f32 %v1037_v12 }
 0x3e7   :  { %v1338_v36 = vpop.eup %1337 }
 0x3e8   :  { %1250 = vmatmul.mubr.msk.f32.vlgmr.msra.gmra.mrb[8].mxu0 %vm148_vm0, %v1338_v36 }
 0x3e9   :  { %1296 = vmatpush3.bf16.msra.mxu0 %v1288_v44  ;;  %1256 = vmatprep.mubr.msk.f32.mxu0 %vm1545_vm9, %v1546_v53 }
 0x3eb   :  { %v1340_v5 = vpop.eup %1339 }
 0x3ec   :  { %1257 = vmatmul.mubr.msk.f32.vlgmr.msra.gmra.mrb[10].mxu0 %vm148_vm0, %v1340_v5  ;;  %v1342_v51 = vpop.eup %1341  ;;  %vm1106_vm0 = vcmask 58368  }
 0x3ed   :  { %v1041_v47 = vmul.f32 %v1342_v51, %v1843_v19  ;;  %v1065_v19 = vld [vmem:[%s1908_s1] sm:$0x3]  ;;  %s1114_s1 = sshll.u32 %s1548_s6, 4  ;;  %s1115_s1 = int_to_ptr.vmem [resolvable:$true] %s1114_s1 }
 0x3ee   :  { %v1077_v32 = vrot.slane %v1065_v19, %v1076_v31  ;;  %v1070_v33 = vrot.slane %v1065_v19, %v1872_v48  ;;  %s1503_s24 = scalar_lea.vmem %s1115_s1, 32  ;;  %p1508_p1 = scmp.lt.s32.totalorder %s1115_s1, %s1115_s1 }
 0x3ef   :  { %p1504_p0 = scmp.ne.s32.totalorder %s1115_s1, %s1503_s24  ;;  %p1509_p2 = scmp.lt.s32.totalorder %s1503_s24, %s1503_s24 }
 0x3f1   :  { %p1510_p3 = por %p1509_p2, %p1508_p1 }
 0x3f3   :  { %p1511_p4 = pnand %p1510_p3, %p1504_p0 }
 0x4bb   :  { %v952_v6 = vpop.f32.mrb[8].mxu0 }
 0x4bc   :  { %v1043_v39 = vmul.f32 %v952_v6, %v952_v6  ;;  %v1251_v7 = vpop.f32.mrb[9].mxu0 }
 0x4be   :  { %v1045_v43 = vsel %vm293_vm4, %v1043_v39, 0.0 }
 0x4bf   :  { %1046 = vadd.xlane.f32.xlu0 %v1045_v43  ;;  %v1025_v8 = vpop.f32.mrb[10].mxu0 }
 0x4c0   :  { %v1044_v41 = vmul.f32 %v1025_v8, %v1025_v8  ;;  %v1258_v9 = vpop.f32.mrb[11].mxu0 }
 0x4c2   :  { %v1048_v10 = vsel %vm293_vm4, %v1044_v41, 0.0 }
 0x4c3   :  { %1049 = vadd.xlane.f32.xlu1 %v1048_v10 }
 0x54c   :  { %v1047_v21 = vpop.xlane.xlu0 %1046 }
 0x54d   :  { %v1051_v60 = vmax.f32 %v1047_v21, 1e-24 }
 0x54f   :  { %1343 = vrsqrt.f32 %v1051_v60 }
 0x550   :  { %v1050_v34 = vpop.xlane.xlu1 %1049  ;;  %1345 = vrsqrt.f32 %v1038_v15 }
 0x551   :  { %v1052_v16 = vmax.f32 %v1050_v34, 1e-24 }
 0x553   :  { %1347 = vrsqrt.f32 %v1052_v16 }
 0x559   :  { %v1344_v53 = vpop.eup %1343 }
 0x55a   :  { %v1055_v49 = vmul.f32 %v1344_v53, %v952_v6  ;;  %v1346_v17 = vpop.eup %1345 }
 0x55b   :  { %v1042_v23 = vmul.f32 %v1346_v17, %v1841_v18 }
 0x55c   :  { %v1057_v20 = vmul.f32 %v1055_v49, %v1041_v47 }
 0x55d   :  { %v1348_v22 = vpop.eup %1347 }
 0x55e   :  { %v1059_v63 = vsel %vm293_vm4, %v1057_v20, 0.0  ;;  %v1056_v25 = vmul.f32 %v1348_v22, %v1025_v8 }
 0x55f   :  { %1060 = vadd.xlane.f32.xlu0 %v1059_v63 }
 0x560   :  { %v1058_v29 = vmul.f32 %v1056_v25, %v1042_v23 }
 0x562   :  { %v1062_v30 = vsel %vm293_vm4, %v1058_v29, 0.0 }
 0x563   :  { %1063 = vadd.xlane.f32.xlu1 %v1062_v30 }
 0x574   :  { %1079 = vbcast.lane.b32.xlu1 %v1077_v32, 256 }
 0x575   :  { %1072 = vbcast.lane.b32.xlu0 %v1070_v33, 256 }
 0x5ec   :  { %v1061_v35 = vpop.xlane.xlu0 %1060 }
 0x5f0   :  { %v1073_v38 = vpop.permute.xlu0 %1072  ;;  %v1064_v18 = vpop.xlane.xlu1 %1063 }
 0x5f1   :  { %v1083_v40 = vmul.f32 %v1073_v38, %v1061_v35 }
 0x5f3   :  { %1088 = vperm.xlu1 %1311, %v1083_v40  }
 0x5f4   :  { %v1080_v42 = vpop.permute.xlu1 %1079 }
 0x5f5   :  { %v1084_v44 = vmul.f32 %v1080_v42, %v1064_v18 }
 0x5f7   :  { %1091 = vperm.xlu1 %1311, %v1084_v44  }
 0x672   :  { %v1089_v27 = vpop.permute.xlu1 %1088 }
 0x673   :  { %v1098_v48 = vrot.slane %v1089_v27, %v1097_v46 }
 0x676   :  { %v1092_v28 = vpop.permute.xlu1 %1091 }
 0x677   :  { %v1102_v50 = vrot.slane %v1092_v28, %v1097_v46 }
 0x679   :  { %v1104_v52 = vsel %vm1103_vm15, %v1102_v50, %v1098_v48 }
 0x67a   :  { %1107 = vst.msk [vmem:[#allocation14] sm:$0x3] %vm1106_vm0, %v1104_v52 }
 0x67b   :  { %1514 = shalt.err (!%p1511_p4)
}
 0x67c   :  { %s1515_s28 = scalar_lea.hbm %s1919_s12, 32 }
 0x67d   :  { %p1516_p5 = scmp.ne.s32.totalorder %s1919_s12, %s1515_s28  ;;  %p1519_p6 = scmp.lt.u32.totalorder %s1515_s28, %s1919_s12 }
 0x67f   :  { %p1521_p7 = pnand %p1519_p6, %p1516_p5 }
 0x681   :  { %1524 = shalt.err (!%p1521_p7)
}
 0x682   :  { %1117 = dma.vmem_to_hbm [thread:$0]  %s1115_s1, 32, %s1919_s12, [#allocation4]  }
 0x683   :  { %1533 = dma.done.wait [#allocation4], 32  }
 0x684   :  { %1534 = vsyncadd [#allocation4], 4294967264 }
 0x685   :  { %1121 = vsyncpa [#allocation3], 1 }
 0x686   :  { %1122 = vsyncpa [#allocation6], 1 }
 0x687   :  { %1123 = vsyncpa [#allocation9], 1 }
 0x688   :  { %1124 = vsyncpa [#allocation12], 1 }
 0x689   :  { %1125 = vsyncpa [#allocation4], 1 }

</bundles_post_ra>
